<compile_context>
chip_gen: v7x
topology: tpu7x:2x2x1
jax: 0.10.0
libtpu: 0.0.40
codegen_flags: <defaults>
</compile_context>

<pallas_src>
from functools import partial

import jax
import jax.numpy as jnp
from jax.experimental import pallas as pl
from jax.experimental.pallas import tpu as pltpu


# ---------------------------------------------------------------------------
# Kernel
# ---------------------------------------------------------------------------
def _mlp_batch_kernel(src_ref, dst_ref,          # (1, TB) int32 edge endpoints
                      tab_ref,                   # (dp, Np)  weight_vec-folded emb^T
                      wslab0_ref,                # (h0p, 4)  [w1_cos | w1_dot | b1 | 0]
                      w2t_ref,                   # (h1p, h0p)
                      wslab1_ref,                # (h1p, 4)  [b2 | w_pred | 0 | 0]
                      bp_ref,                    # (1,) f32 in SMEM (predict bias)
                      out_ref):                  # (1, TB) f32 predictions
    f32 = jnp.float32
    tab = tab_ref[...]                                     # (dp, Np) storage dtype
    n_pad = tab.shape[1]
    tb = src_ref.shape[1]

    # In-kernel gather: one-hot (iota == idx) matmul on the MXU.  Padded table
    # columns/rows are zero, so they contribute nothing downstream.
    node_ids = jax.lax.broadcasted_iota(jnp.int32, (n_pad, tb), 0)

    def gather(idx_ref):
        onehot = (node_ids == idx_ref[...]).astype(tab.dtype)       # (Np, TB)
        return jnp.dot(tab, onehot, preferred_element_type=f32)     # (dp, TB) f32

    a = gather(src_ref)                                    # weight_vec * emb1 (feature-major)
    b = gather(dst_ref)                                    # weight_vec * emb2

    # --- similarity features (f32, VPU/XLU); padded feature rows are zero ---
    dot_ab = jnp.sum(a * b, axis=0, keepdims=True)         # (1, TB)   torch.dot(a, b)
    na = jnp.sqrt(jnp.sum(a * a, axis=0, keepdims=True))
    nb = jnp.sqrt(jnp.sum(b * b, axis=0, keepdims=True))
    eps = jnp.float32(1e-8)
    denom = jnp.maximum(na, eps) * jnp.maximum(nb, eps)    # torch clamps each norm separately
    cos = dot_ab * pl.reciprocal(denom, approx=False)      # exact reciprocal (parity w/ torch)

    # TODO(synk): nn.Dropout is identity in eval mode; training-mode dropout not implemented.
    # --- layer 1: Linear(2, h0) + ReLU as two VPU broadcast-FMAs (K=2 -> skip MXU) ---
    w1c0 = wslab0_ref[:, 0:1]                              # (h0p, 1) f32
    w1c1 = wslab0_ref[:, 1:2]
    b1 = wslab0_ref[:, 2:3]
    h1 = jnp.maximum(w1c0 * cos + w1c1 * dot_ab + b1, 0.0)  # (h0p, TB) f32

    # --- layer 2: Linear(h0, h1) + ReLU on the MXU, f32 accumulation ---
    w2 = w2t_ref[...]                                      # (h1p, h0p)
    b2 = wslab1_ref[:, 0:1]                                # (h1p, 1) f32
    h2 = jnp.maximum(
        jnp.dot(w2, h1.astype(w2.dtype), preferred_element_type=f32) + b2, 0.0)

    # --- predict layer: Linear(h1, 1) as a sublane reduction -> lane-dense output ---
    wp = wslab1_ref[:, 1:2]                                # (h1p, 1) f32
    out_ref[...] = jnp.sum(wp * h2, axis=0, keepdims=True) + bp_ref[0]


# ---------------------------------------------------------------------------
# One-time prep (hoisted out of the per-forward path)
# ---------------------------------------------------------------------------
def _round_up(x, m):
    return ((x + m - 1) // m) * m


def prep_mlp(params, emb_matrix0, storage_dtype=jnp.bfloat16):
    """Fold weight_vec into the embedding table, transpose to feature-major
    (features on sublanes, nodes on lanes), zero-pad to layout-friendly shapes,
    cast to the storage dtype, and pack the small per-layer weights into two
    consolidated slabs.  Called once; results reused by every forward."""
    w_vec, (w1, b1), (w2, b2), (wp, bp) = params
    n_nodes, D = emb_matrix0.shape
    h0 = w1.shape[1]
    h1d = w2.shape[1]

    dp = _round_up(D, 16)        # sublane multiple for both f32 (8) and bf16 (16)
    npd = _round_up(n_nodes, 16)  # one-hot sublane / gather-matmul K dim
    h0p = _round_up(h0, 16)       # full-array blocks: no 128-lane rule; MXU pads K
    h1p = _round_up(h1d, 16)

    # weight_vec * emb rows, transposed to (dp, Np); padded rows/cols are zero so
    # they contribute nothing to the gather matmul or the dot / norm reductions.
    w_emb_t = (emb_matrix0.astype(jnp.float32) *
               w_vec.astype(jnp.float32).reshape(1, -1)).T
    table = (jnp.zeros((dp, npd), jnp.float32)
             .at[:D, :n_nodes].set(w_emb_t)).astype(storage_dtype)

    # Layer-1 + bias slab: col0 = w1 row for the cos feature, col1 = row for the
    # dot feature, col2 = b1.
    wslab0 = jnp.zeros((h0p, 4), jnp.float32)
    wslab0 = wslab0.at[:h0, 0].set(jnp.asarray(w1, jnp.float32)[0, :])
    wslab0 = wslab0.at[:h0, 1].set(jnp.asarray(w1, jnp.float32)[1, :])
    wslab0 = wslab0.at[:h0, 2].set(jnp.asarray(b1, jnp.float32))

    w2t = (jnp.zeros((h1p, h0p), jnp.float32)
           .at[:h1d, :h0].set(jnp.asarray(w2, jnp.float32).T)).astype(storage_dtype)

    # Layer-2 bias + predict-layer weight slab.
    wslab1 = jnp.zeros((h1p, 4), jnp.float32)
    wslab1 = wslab1.at[:h1d, 0].set(jnp.asarray(b2, jnp.float32))
    wslab1 = wslab1.at[:h1d, 1].set(jnp.asarray(wp, jnp.float32)[:, 0])

    bp_s = jnp.asarray(bp, jnp.float32).reshape(1)     # predict bias -> SMEM scalar

    return {"table": table, "wslab0": wslab0, "w2t": w2t,
            "wslab1": wslab1, "bp": bp_s, "n_nodes": n_nodes}


# ---------------------------------------------------------------------------
# Forward wrappers
# ---------------------------------------------------------------------------
@partial(jax.jit, static_argnames=("tile_b",))
def mlp_forward_batch(edges, prepped, *, tile_b=2048):
    """Batched forward: edges int32 (2, B) -> predictions (B,) float32.

    tile_b = edges per grid step (lane-tile width, multiple of 128).  2048-4096 is
    a good range on all generations (the kernel is overhead/DMA-bound, so bigger
    tiles amortize the ~0.35 us per-grid-step cost).  For small batches the tile is
    automatically capped so the grid keeps >= 2 tiles (both v7x TensorCores busy)."""
    table = prepped["table"]
    wslab0 = prepped["wslab0"]
    w2t = prepped["w2t"]
    wslab1 = prepped["wslab1"]
    bp = prepped["bp"]

    src = edges[0].astype(jnp.int32)
    dst = edges[1].astype(jnp.int32)
    n_edges = src.shape[0]

    # Effective tile: <= tile_b, multiple of 128, and (when the batch allows) at
    # most half the padded batch so the grid has >= 2 "parallel" tiles.
    b_min = _round_up(max(n_edges, 1), 128)
    tile_eff = min(tile_b, b_min)
    if b_min >= 256:
        tile_eff = min(tile_eff, max(128, (b_min // 2) // 128 * 128))
    tile_eff = max(128, (tile_eff // 128) * 128)
    b_pad = _round_up(max(n_edges, 1), tile_eff)

    pad = b_pad - n_edges
    if pad:
        src = jnp.concatenate([src, jnp.zeros((pad,), jnp.int32)])
        dst = jnp.concatenate([dst, jnp.zeros((pad,), jnp.int32)])
    src = src.reshape(1, b_pad)
    dst = dst.reshape(1, b_pad)

    idx_spec = pl.BlockSpec((1, tile_eff), lambda i: (0, i))

    def _full(a):  # full-array block, constant index map -> loaded once, stays resident
        return pl.BlockSpec(a.shape, lambda i: (0, 0))

    out = pl.pallas_call(
        _mlp_batch_kernel,
        grid=(b_pad // tile_eff,),
        in_specs=[idx_spec, idx_spec,
                  _full(table), _full(wslab0), _full(w2t), _full(wslab1),
                  pl.BlockSpec(memory_space=pltpu.MemorySpace.SMEM)],
        out_specs=pl.BlockSpec((1, tile_eff), lambda i: (0, i)),
        out_shape=jax.ShapeDtypeStruct((1, b_pad), jnp.float32),
        compiler_params=pltpu.CompilerParams(
            # Edge tiles are independent -> shard across v7x's 2 TensorCores.
            dimension_semantics=("parallel",),
            # Explicit VMEM budget: resident table + index/output tiles + f32
            # temporaries stay well under 32 MiB even at tile_b=4096, which also
            # fits inside v7x's 64 MiB physical VMEM.
            vmem_limit_bytes=32 * 1024 * 1024),
    )(src, dst, table, wslab0, w2t, wslab1, bp)
    return out[0, :n_edges]


def mlp_forward(edge, prepped, *, tile_b=2048):
    """Single-edge forward matching MLP.forward: returns prediction of shape (1,)."""
    edges = jnp.asarray(edge, jnp.int32).reshape(2, 1)
    return mlp_forward_batch(edges, prepped, tile_b=tile_b)


# ---------------------------------------------------------------------------
# Parameter init matching the module's __init__ (shapes + init schemes)
# ---------------------------------------------------------------------------
def init_params(key, emb_dim, hidden_layer):
    keys = jax.random.split(key, 2 + len(hidden_layer))
    # self.weight_vec = nn.init.normal_(torch.empty(1, emb_dim))
    w_vec = jax.random.normal(keys[0], (1, emb_dim), jnp.float32)

    layers = []
    in_dim = 2
    for i, h in enumerate(hidden_layer):
        # xavier_uniform_ on Linear(in_dim, h); bias zeroed. Stored as (in, out).
        limit = (6.0 / (in_dim + h)) ** 0.5
        w = jax.random.uniform(keys[1 + i], (in_dim, h), jnp.float32, -limit, limit)
        b = jnp.zeros((h,), jnp.float32)
        layers.append((w, b))
        in_dim = h

    # predict_layer: kaiming_uniform_(a=1, nonlinearity='sigmoid') -> gain=1,
    # bound = sqrt(3 / fan_in). Stored as (in, out) = (in_dim, 1).
    bound = (3.0 / in_dim) ** 0.5
    wp = jax.random.uniform(keys[-1], (in_dim, 1), jnp.float32, -bound, bound)
    bp = jnp.zeros((1,), jnp.float32)

    return (w_vec, layers[0], layers[1], (wp, bp))


if __name__ == "__main__":
    key = jax.random.PRNGKey(0)
    k_param, k_emb, k_edge = jax.random.split(key, 3)

    N, D = 8, 32                 # embedding table: 8 nodes, 32-dim embeddings
    hidden_layer = [32, 16]      # Linear(2,32)->ReLU->Linear(32,16)->ReLU->Linear(16,1)
    B = 512                      # batch of edges per call

    emb_matrix0 = jax.random.normal(k_emb, (N, D), jnp.float32)
    params = init_params(k_param, D, hidden_layer)

    # One-time prep (fold weight_vec, transpose, pad, pack, cast). Pass jnp.float32
    # for exact-f32 parity with the torch reference; bf16 halves DMA bytes.
    prepped = prep_mlp(params, emb_matrix0, storage_dtype=jnp.bfloat16)

    edges = jax.random.randint(k_edge, (2, B), 0, N, dtype=jnp.int32)
    preds = jax.block_until_ready(mlp_forward_batch(edges, prepped))
    assert preds.shape == (B,) and preds.dtype == jnp.float32

    # Single-edge path, matching the module's forward() output shape (1,).
    single = jax.block_until_ready(mlp_forward(edges[:, 0], prepped))
    assert single.shape == (1,) and single.dtype == jnp.float32
    assert jnp.allclose(single[0], preds[0], rtol=1e-5, atol=1e-5)

    print("KERNEL_OK")
</pallas_src>

<mosaic_0001>
module attributes {stable_mosaic.version = 11 : i64} {
  func.func @_mlp_batch_kernel(%arg0: i32, %arg1: memref<1x256xi32, #tpu.memory_space<vmem>>, %arg2: memref<1x256xi32, #tpu.memory_space<vmem>>, %arg3: memref<32x16xbf16, #tpu.memory_space<vmem>>, %arg4: memref<32x4xf32, #tpu.memory_space<vmem>>, %arg5: memref<16x32xbf16, #tpu.memory_space<vmem>>, %arg6: memref<16x4xf32, #tpu.memory_space<vmem>>, %arg7: memref<1xf32, #tpu.memory_space<smem>>, %arg8: memref<1x256xf32, #tpu.memory_space<vmem>>) attributes {dimension_semantics = [#tpu.dimension_semantics<parallel>], iteration_bounds = array<i64: 2>, scalar_prefetch = 0 : i64, scratch_operands = 0 : i64, tpu.core_type = #tpu.core_type<tc>, window_params = [{transform_indices = @transform_0, window_bounds = array<i64: 1, 256>}, {transform_indices = @transform_1, window_bounds = array<i64: 1, 256>}, {pipeline_mode = #tpu.pipeline_mode<synchronous>, transform_indices = @transform_2, window_bounds = array<i64: 32, 16>}, {pipeline_mode = #tpu.pipeline_mode<synchronous>, transform_indices = @transform_3, window_bounds = array<i64: 32, 4>}, {pipeline_mode = #tpu.pipeline_mode<synchronous>, transform_indices = @transform_4, window_bounds = array<i64: 16, 32>}, {pipeline_mode = #tpu.pipeline_mode<synchronous>, transform_indices = @transform_5, window_bounds = array<i64: 16, 4>}, {transform_indices = @transform_6, window_bounds = array<i64: 1>}, {transform_indices = @transform_7, window_bounds = array<i64: 1, 256>}]} {
    %c0 = arith.constant 0 : index
    %c0_0 = arith.constant 0 : index
    %0 = vector.load %arg3[%c0, %c0_0] : memref<32x16xbf16, #tpu.memory_space<vmem>>, vector<32x16xbf16>
    %1 = tpu.iota {dimensions = array<i32: 0>} : vector<16x256xi32>
    %c0_1 = arith.constant 0 : index
    %c0_2 = arith.constant 0 : index
    %2 = vector.load %arg1[%c0_1, %c0_2] : memref<1x256xi32, #tpu.memory_space<vmem>>, vector<1x256xi32>
    %3 = vector.broadcast %2 : vector<1x256xi32> to vector<16x256xi32>
    %4 = arith.cmpi eq, %1, %3 : vector<16x256xi32>
    %5 = arith.extui %4 : vector<16x256xi1> to vector<16x256xi32>
    %6 = arith.sitofp %5 : vector<16x256xi32> to vector<16x256xf32>
    %7 = arith.truncf %6 : vector<16x256xf32> to vector<16x256xbf16>
    %cst = arith.constant dense<0.000000e+00> : vector<32x256xf32>
    %8 = tpu.matmul %0, %7, %cst {dimension_numbers = #tpu.dot_dimension_numbers<[1], [0], [0], [1], [0, 0, 1, 1], [], []>} : vector<32x16xbf16>, vector<16x256xbf16>, vector<32x256xf32> -> vector<32x256xf32>
    %c0_3 = arith.constant 0 : index
    %c0_4 = arith.constant 0 : index
    %9 = vector.load %arg2[%c0_3, %c0_4] : memref<1x256xi32, #tpu.memory_space<vmem>>, vector<1x256xi32>
    %10 = vector.broadcast %9 : vector<1x256xi32> to vector<16x256xi32>
    %11 = arith.cmpi eq, %1, %10 : vector<16x256xi32>
    %12 = arith.extui %11 : vector<16x256xi1> to vector<16x256xi32>
    %13 = arith.sitofp %12 : vector<16x256xi32> to vector<16x256xf32>
    %14 = arith.truncf %13 : vector<16x256xf32> to vector<16x256xbf16>
    %cst_5 = arith.constant dense<0.000000e+00> : vector<32x256xf32>
    %15 = tpu.matmul %0, %14, %cst_5 {dimension_numbers = #tpu.dot_dimension_numbers<[1], [0], [0], [1], [0, 0, 1, 1], [], []>} : vector<32x16xbf16>, vector<16x256xbf16>, vector<32x256xf32> -> vector<32x256xf32>
    %16 = arith.mulf %8, %15 : vector<32x256xf32>
    %cst_6 = arith.constant dense<0.000000e+00> : vector<256xf32>
    %17 = vector.multi_reduction <add>, %16, %cst_6 [0] : vector<32x256xf32> to vector<256xf32>
    %18 = vector.shape_cast %17 : vector<256xf32> to vector<1x256xf32>
    %19 = arith.mulf %8, %8 : vector<32x256xf32>
    %cst_7 = arith.constant dense<0.000000e+00> : vector<256xf32>
    %20 = vector.multi_reduction <add>, %19, %cst_7 [0] : vector<32x256xf32> to vector<256xf32>
    %21 = vector.shape_cast %20 : vector<256xf32> to vector<1x256xf32>
    %22 = math.sqrt %21 : vector<1x256xf32>
    %23 = arith.mulf %15, %15 : vector<32x256xf32>
    %cst_8 = arith.constant dense<0.000000e+00> : vector<256xf32>
    %24 = vector.multi_reduction <add>, %23, %cst_8 [0] : vector<32x256xf32> to vector<256xf32>
    %25 = vector.shape_cast %24 : vector<256xf32> to vector<1x256xf32>
    %26 = math.sqrt %25 : vector<1x256xf32>
    %cst_9 = arith.constant 9.99999993E-9 : f32
    %27 = vector.broadcast %cst_9 : f32 to vector<1x256xf32>
    %28 = arith.maximumf %22, %27 : vector<1x256xf32>
    %cst_10 = arith.constant 9.99999993E-9 : f32
    %29 = vector.broadcast %cst_10 : f32 to vector<1x256xf32>
    %30 = arith.maximumf %26, %29 : vector<1x256xf32>
    %31 = arith.mulf %28, %30 : vector<1x256xf32>
    %32 = tpu.reciprocal %31 : vector<1x256xf32> -> vector<1x256xf32>
    %33 = arith.mulf %18, %32 : vector<1x256xf32>
    %c0_11 = arith.constant 0 : index
    %c0_12 = arith.constant 0 : index
    %34 = vector.load %arg4[%c0_11, %c0_12] : memref<32x4xf32, #tpu.memory_space<vmem>>, vector<32x1xf32>
    %c0_13 = arith.constant 0 : index
    %c1 = arith.constant 1 : index
    %35 = vector.load %arg4[%c0_13, %c1] : memref<32x4xf32, #tpu.memory_space<vmem>>, vector<32x1xf32>
    %c0_14 = arith.constant 0 : index
    %c2 = arith.constant 2 : index
    %36 = vector.load %arg4[%c0_14, %c2] : memref<32x4xf32, #tpu.memory_space<vmem>>, vector<32x1xf32>
    %37 = vector.broadcast %34 : vector<32x1xf32> to vector<32x256xf32>
    %38 = vector.broadcast %33 : vector<1x256xf32> to vector<32x256xf32>
    %39 = arith.mulf %37, %38 : vector<32x256xf32>
    %40 = vector.broadcast %35 : vector<32x1xf32> to vector<32x256xf32>
    %41 = vector.broadcast %18 : vector<1x256xf32> to vector<32x256xf32>
    %42 = arith.mulf %40, %41 : vector<32x256xf32>
    %43 = arith.addf %39, %42 : vector<32x256xf32>
    %44 = vector.broadcast %36 : vector<32x1xf32> to vector<32x256xf32>
    %45 = arith.addf %43, %44 : vector<32x256xf32>
    %cst_15 = arith.constant 0.000000e+00 : f32
    %46 = vector.broadcast %cst_15 : f32 to vector<32x256xf32>
    %47 = arith.maximumf %45, %46 : vector<32x256xf32>
    %c0_16 = arith.constant 0 : index
    %c0_17 = arith.constant 0 : index
    %48 = vector.load %arg5[%c0_16, %c0_17] : memref<16x32xbf16, #tpu.memory_space<vmem>>, vector<16x32xbf16>
    %c0_18 = arith.constant 0 : index
    %c0_19 = arith.constant 0 : index
    %49 = vector.load %arg6[%c0_18, %c0_19] : memref<16x4xf32, #tpu.memory_space<vmem>>, vector<16x1xf32>
    %50 = arith.truncf %47 : vector<32x256xf32> to vector<32x256xbf16>
    %cst_20 = arith.constant dense<0.000000e+00> : vector<16x256xf32>
    %51 = tpu.matmul %48, %50, %cst_20 {dimension_numbers = #tpu.dot_dimension_numbers<[1], [0], [0], [1], [0, 0, 1, 1], [], []>} : vector<16x32xbf16>, vector<32x256xbf16>, vector<16x256xf32> -> vector<16x256xf32>
    %52 = vector.broadcast %49 : vector<16x1xf32> to vector<16x256xf32>
    %53 = arith.addf %51, %52 : vector<16x256xf32>
    %cst_21 = arith.constant 0.000000e+00 : f32
    %54 = vector.broadcast %cst_21 : f32 to vector<16x256xf32>
    %55 = arith.maximumf %53, %54 : vector<16x256xf32>
    %c0_22 = arith.constant 0 : index
    %c1_23 = arith.constant 1 : index
    %56 = vector.load %arg6[%c0_22, %c1_23] : memref<16x4xf32, #tpu.memory_space<vmem>>, vector<16x1xf32>
    %57 = vector.broadcast %56 : vector<16x1xf32> to vector<16x256xf32>
    %58 = arith.mulf %57, %55 : vector<16x256xf32>
    %cst_24 = arith.constant dense<0.000000e+00> : vector<256xf32>
    %59 = vector.multi_reduction <add>, %58, %cst_24 [0] : vector<16x256xf32> to vector<256xf32>
    %60 = vector.shape_cast %59 : vector<256xf32> to vector<1x256xf32>
    %c0_25 = arith.constant 0 : index
    %61 = memref.load %arg7[%c0_25] : memref<1xf32, #tpu.memory_space<smem>>
    %62 = vector.broadcast %61 : f32 to vector<1x256xf32>
    %63 = arith.addf %60, %62 : vector<1x256xf32>
    %c0_26 = arith.constant 0 : index
    %c0_27 = arith.constant 0 : index
    %64 = vector.load %arg8[%c0_26, %c0_27] : memref<1x256xf32, #tpu.memory_space<vmem>>, vector<1x256xf32>
    tpu.vector_store %arg8[%c0_26, %c0_27], %63 {strides = array<i32>} : memref<1x256xf32, #tpu.memory_space<vmem>>, vector<1x256xf32>,
    return
  }
  func.func @transform_0(%arg0: i32) -> (i32, i32) {
    %c0_i32 = arith.constant 0 : i32
    %c0_i32_0 = arith.constant 0 : i32
    return %c0_i32, %arg0 : i32, i32
  }
  func.func @transform_1(%arg0: i32) -> (i32, i32) {
    %c0_i32 = arith.constant 0 : i32
    %c0_i32_0 = arith.constant 0 : i32
    return %c0_i32, %arg0 : i32, i32
  }
  func.func @transform_2(%arg0: i32) -> (i32, i32) {
    %c0_i32 = arith.constant 0 : i32
    %c0_i32_0 = arith.constant 0 : i32
    %c0_i32_1 = arith.constant 0 : i32
    return %c0_i32, %c0_i32_0 : i32, i32
  }
  func.func @transform_3(%arg0: i32) -> (i32, i32) {
    %c0_i32 = arith.constant 0 : i32
    %c0_i32_0 = arith.constant 0 : i32
    %c0_i32_1 = arith.constant 0 : i32
    return %c0_i32, %c0_i32_0 : i32, i32
  }
  func.func @transform_4(%arg0: i32) -> (i32, i32) {
    %c0_i32 = arith.constant 0 : i32
    %c0_i32_0 = arith.constant 0 : i32
    %c0_i32_1 = arith.constant 0 : i32
    return %c0_i32, %c0_i32_0 : i32, i32
  }
  func.func @transform_5(%arg0: i32) -> (i32, i32) {
    %c0_i32 = arith.constant 0 : i32
    %c0_i32_0 = arith.constant 0 : i32
    %c0_i32_1 = arith.constant 0 : i32
    return %c0_i32, %c0_i32_0 : i32, i32
  }
  func.func @transform_6(%arg0: i32) -> i32 {
    %c0_i32 = arith.constant 0 : i32
    %c0_i32_0 = arith.constant 0 : i32
    return %c0_i32 : i32
  }
  func.func @transform_7(%arg0: i32) -> (i32, i32) {
    %c0_i32 = arith.constant 0 : i32
    %c0_i32_0 = arith.constant 0 : i32
    return %c0_i32, %arg0 : i32, i32
  }
}

</mosaic_0001>

<bundles_post_ra>
// kernel: mlp_forward_batch.1
= control target key start
LH: loop header
LB: loop body
LE: loop exit
PB: predicated region body
PF: predicated region fallthrough
CT: control target
= control target key end

     0   :  { %s1272_s0 = inlined_call_operand.vmem [shape: s32[1,512], index: 0, kind: input, shape index: {}]   ;;  %s1273_s1 = inlined_call_operand.vmem [shape: s32[1,512], index: 1, kind: input, shape index: {}]   ;;  %s1274_s2 = inlined_call_operand.vmem [shape: bf16[32,16], index: 2, kind: input, shape index: {}]   ;;  %s1275_s3 = inlined_call_operand.vmem [shape: f32[32,4], index: 3, kind: input, shape index: {}]   ;;  %s1276_s4 = inlined_call_operand.vmem [shape: bf16[16,32], index: 4, kind: input, shape index: {}]   ;;  %s1277_s5 = inlined_call_operand.vmem [shape: f32[16,4], index: 5, kind: input, shape index: {}]   ;;  %s1278_s6 = inlined_call_operand.<no memory space> [shape: f32[1], index: 6, kind: input, shape index: {}]   ;;  %s1279_s7 = inlined_call_operand.hbm [shape: f32[1,512], index: 7, kind: output, shape index: {}]  }
   0x1   :  { %12 = sst [smem:[#allocation2]] %s1278_s6 }
   0x2   :  { %13 = vsyncpa [#allocation4], 0 }
   0x3   :  { %15 = vsyncpa [#allocation4 + $0x1], 0  ;;  %s1113_s26 = smov 0   ;;  %s1115_s27 = smov 0  }
   0x4   :  { %s1117_s28 = smov 0   ;;  %s1119_s29 = smov 0  }
   0x5 LB: > { %s1134_s6 = sadd.s32 4294967295, %s1062_s29   ;;  %s893_s30 = sadd.s32 4294967294, %s1062_s29   ;;  %s1062_s29 = sphi %s1119_s29, %s1285_s29   ;;  %s1058_s28 = sphi %s1117_s28, %s1284_s28   ;;  %s1054_s27 = sphi %s1115_s27, %s1283_s27   ;;  %s1050_s26 = sphi %s1113_s26, %s1282_s26  }
   0x6   : > { %s1138_s8 = sadd.s32 1, %s1062_s29   ;;  %s185_s9 = sadd.s32 1, %s1058_s28 }
   0x7   : > { %s182_s10 = ssub.s32 %s1062_s29, %s1138_s8  ;;  %p195_p0 = scmp.ne.s32.totalorder %s1058_s28, %s1054_s27 }
   0x8   : > { %p183_p1 = scmp.eq.s32.totalorder %s182_s10, 0  ;;  %p196_p2 = scmp.eq.s32.totalorder %s1134_s6, 1 }
   0x9   : > { %p201_p3 = scmp.ne.s32.totalorder %s1054_s27, %s1050_s26  ;;  %p202_p4 = scmp.eq.s32.totalorder %s893_s30, 1 }
   0xa   : > { %s1149_s11 = scalar_select %p183_p1, %s1058_s28, %s185_s9  }
   0xb   : > { %p1151_p5 = por %p196_p2, %p195_p0  ;;  %p1155_p6 = por %p202_p4, %p201_p3 }
   0xc   : > { %p896_p7 = scmp.ge.s32.totalorder %s1062_s29, 1  ;;  %p251_p8 = scmp.lt.s32.totalorder %s1062_s29, 3 }
   0xe   : > { %p252_p9 = pnand %p896_p7, %p251_p8 }
   0xf   : > { %s898_s14 = sshll.u32 (!%p252_p9), %s1134_s6, 1  ;;  %v302_v0 = vlaneseq (!%p252_p9)  ;;  %v1064_v1 = vmov (!%p252_p9), 0   ;;  %v1065_v3 = vmov (!%p252_p9), 1   ;;  %v590_v4 = vld [vmem:[%s1275_s3] sm:$0xff] (!%p252_p9)  ;;  %v591_v8 = vld [vmem:[%s1275_s3 + $0x8] sm:$0xff] (!%p252_p9)  ;;  %v593_v15 = vld [vmem:[%s1275_s3 + $0x18] sm:$0xff] (!%p252_p9) }
  0x10   : > { %255 = sbr.rel (%p252_p9) target bundleno = 584 (0x248), region = 48  ;;  %p287_p10 = scmp.lt.s32.totalorder (!%p252_p9), %s898_s14, 3  ;;  %377 = vmatprep.mubr.bf16.mxu0 (!%p252_p9), %v1064_v1  ;;  %453 = vmatprep.mubr.bf16.mxu1 (!%p252_p9), %v1064_v1  ;;  %v1066_v16 = vmov (!%p252_p9), 1.0|1.0   ;;  %v592_v17 = vld [vmem:[%s1275_s3 + $0x10] sm:$0xff] (!%p252_p9)  ;;  %v985_v18 = vld [vmem:[%s1274_s2] sm:$0xff] (!%p252_p9)  }
  0x11   : > { %v1165_v2 = vshrl.u32 (!%p252_p9), %v302_v0, 7  ;;  %974 = vset.pattern.permute.xlu0 (!%p252_p9), %v1064_v1  ;;  %975 = vset.pattern.permute.xlu1 (!%p252_p9), %v1065_v3  ;;  %vm338_vm12 = vcmask (!%p252_p9), 130048   ;;  %v986_v19 = vld [vmem:[%s1274_s2 + $0x8] sm:$0xff] (!%p252_p9)   ;;  %v1067_v20 = vmov (!%p252_p9), 2   ;;  %v688_v22 = vld [vmem:[%s1277_s5] sm:$0xff] (!%p252_p9)  ;;  %s786_s24 = sld [smem:[#allocation2]] (!%p252_p9) }
  0x12   : > { %623 = vperm.xlu1 (!%p252_p9), %975, %v590_v4   ;;  %596 = vperm.xlu0 (!%p252_p9), %974, %v590_v4   ;;  %v689_v21 = vld [vmem:[%s1277_s5 + $0x8] sm:$0xff] (!%p252_p9)  ;;  %s283_s25 = sand.u32 (!%p252_p9), 1, %s1054_s27   ;;  %s929_s9 = sshll.u32 (!%p252_p9), %s1134_s6, 5 }
  0x13   : > { %v312_v5 = vsub.s32 (!%p252_p9), 1, %v1165_v2  ;;  %v308_v6 = vsub.s32 (!%p252_p9), 0, %v1165_v2  ;;  %v304_v7 = vadd.s32 (!%p252_p9), 8, %v1165_v2  ;;  %s897_s30 = sshll.u32 (!%p252_p9), %s283_s25, 1  ;;  %s1230_s17 = scalar_lea.hbm (!%p252_p9), %s1279_s7, %s929_s9 }
  0x14   : > { %s285_s10 = scalar_lea.vmem (!%p252_p9), [#allocation3], %s897_s30  ;;  %s814_s18 = scalar_lea.sflag (!%p252_p9), [#allocation4], %s283_s25 }
  0x15   : > { %s1069_s6 = smov (!%p252_p9), [#allocation3]  }
  0x16   : > { %627 = vperm.xlu1 (!%p252_p9), %975, %v591_v8   ;;  %601 = vperm.xlu0 (!%p252_p9), %974, %v591_v8   ;;  %s1004_s20 = sshll.u32 (!%p252_p9), %s1069_s6, 4  ;;  %s1005_s20 = int_to_ptr.vmem [resolvable:$false] %s1004_s20 }
  0x17   : > { %s1287_s14 = smov (!%p287_p10, %s898_s14), 3  ;;  %s1006_s21 = scalar_lea.vmem %s1005_s20, 64 }
  0x18   : > { %s289_s19 = scalar_lea.vmem %s1272_s0, %s1287_s14  ;;  %s294_s22 = scalar_lea.vmem %s1273_s1, %s1287_s14 }
  0x19   : > { %v305_v9 = vld [vmem:[%s289_s19] sm:$0x3]  ;;  %s828_s14 = sshll.u32 %s285_s10, 4  ;;  %s1232_s14 = int_to_ptr.vmem [resolvable:$true] %s828_s14 }
  0x1a   : > { %v398_v10 = vld [vmem:[%s294_s22] sm:$0x3]  ;;  %v313_v11 = vrot.slane %v305_v9, %v312_v5  ;;  %v309_v13 = vrot.slane %v305_v9, %v308_v6  ;;  %976 = vset.pattern.permute.xlu1 %v1064_v1  ;;  %606 = vperm.xlu0 %974, %v592_v17   ;;  %s1000_s19 = scalar_lea.vmem %s1232_s14, 32  ;;  %p1007_p0 = scmp.lt.s32.totalorder %s1232_s14, %s1005_s20 }
  0x1b   : > { %v406_v12 = vrot.slane %v398_v10, %v312_v5  ;;  %v402_v14 = vrot.slane %v398_v10, %v308_v6  ;;  %611 = vperm.xlu1 %976, %v593_v15   ;;  %p1001_p11 = scmp.ne.s32.totalorder %s1232_s14, %s1000_s19  ;;  %p1008_p1 = scmp.lt.s32.totalorder %s1006_s21, %s1000_s19 }
  0x1c   : > { %vm315_vm0 = vcmp.eq.s32.totalorder %v1165_v2, %v313_v11  ;;  %vm317_vm1 = vcmp.eq.s32.totalorder %v304_v7, %v313_v11  ;;  %vm314_vm5 = vcmp.eq.s32.totalorder %v1165_v2, %v309_v13  ;;  %vm316_vm6 = vcmp.eq.s32.totalorder %v304_v7, %v309_v13 }
  0x1d   : > { %vm408_vm2 = vcmp.eq.s32.totalorder %v1165_v2, %v406_v12  ;;  %vm410_vm3 = vcmp.eq.s32.totalorder %v304_v7, %v406_v12  ;;  %vm906_vm4 = vmpackc.low %vm317_vm1, %vm315_vm0  ;;  %vm407_vm7 = vcmp.eq.s32.totalorder %v1165_v2, %v402_v14  ;;  %vm409_vm8 = vcmp.eq.s32.totalorder %v304_v7, %v402_v14  ;;  %p1002_p12 = pnand %p1001_p11, %p1151_p5  ;;  %p1009_p2 = por %p1008_p1, %p1007_p0 }
  0x1e   : > { %907 = vmatprep.subr.msk.bf16.mxu0 %vm906_vm4, %v1066_v16  ;;  %vm916_vm9 = vmpackc.low %vm410_vm3, %vm408_vm2  ;;  %977 = vset.pattern.permute.xlu0 %v1065_v3 }
  0x1f   : > { %917 = vmatprep.subr.msk.bf16.mxu1 %vm916_vm9, %v1066_v16  ;;  %vm908_vm10 = vmpackc.low %vm316_vm6, %vm314_vm5  ;;  %978 = vset.pattern.permute.xlu1 %v1065_v3  ;;  %vm709_vm5 = vcmask 261120   ;;  %vm810_vm6 = vcmp.lt.s32.totalorder %v302_v0, 256  ;;  %p1003_p13 = pneg %p1002_p12 }
  0x20   : > { %909 = vmatpush1.bf16.msk.msra.mxu0 %vm908_vm10, %v1066_v16  ;;  %vm918_vm11 = vmpackc.low %vm409_vm8, %vm407_vm7  ;;  %635 = vperm.xlu1 %978, %v593_v15  }
  0x21   : > { %919 = vmatpush1.bf16.msk.msra.mxu1 %vm918_vm11, %v1066_v16  ;;  %631 = vperm.xlu0 %977, %v592_v17   ;;  %p1010_p3 = pnand %p1009_p2, %p1003_p13 }
  0x23   : > { %910 = vmatmul.mubr.msk.bf16.vlgmr.msra.gmra.mrb[0].mxu0 %vm338_vm12, %v985_v18 }
  0x24   : > { %920 = vmatmul.mubr.msk.bf16.vlgmr.msra.gmra.mrb[0].mxu1 %vm338_vm12, %v985_v18  ;;  %387 = vmatprep.mubr.bf16.mxu0 %v1064_v1 }
  0x25   : > { %463 = vmatprep.mubr.bf16.mxu1 %v1064_v1  ;;  %979 = vset.pattern.permute.xlu1 %v1067_v20 }
  0x26   : > { %655 = vperm.xlu1 %979, %v590_v4   ;;  %980 = vset.pattern.permute.xlu0 %v1067_v20 }
  0x27   : > { %659 = vperm.xlu0 %980, %v591_v8  }
  0x2a   : > { %663 = vperm.xlu1 %979, %v592_v17  }
  0x2b   : > { %911 = vmatmul.mubr.msk.bf16.gmra.mrb[4].mxu0 %vm338_vm12, %v986_v19  ;;  %981 = vset.pattern.permute.xlu0 %v1064_v1 }
  0x2c   : > { %921 = vmatmul.mubr.msk.bf16.gmra.mrb[4].mxu1 %vm338_vm12, %v986_v19  ;;  %745 = vmatprep.mubr.bf16.mxu0 %v1064_v1 }
  0x2d   : > { %696 = vperm.xlu0 %981, %v688_v22  }
  0x2e   : > { %667 = vperm.xlu1 %979, %v593_v15  }
  0x31   : > { %984 = vset.pattern.permute.xlu0 %v1065_v3 }
  0x32   : > { %982 = vset.pattern.permute.xlu1 %v1064_v1  ;;  %765 = vperm.xlu0 %984, %v689_v21  }
  0x33   : > { %701 = vperm.xlu1 %982, %v689_v21  }
  0x37   : > { %983 = vset.pattern.permute.xlu1 %v1065_v3 }
  0x38   : > { %761 = vperm.xlu1 %983, %v688_v22  }
  0xf6   : > { %v379_v23 = vpop.f32.mrb[0].mxu0 }
  0xf7   : > { %v455_v24 = vpop.f32.mrb[0].mxu1  ;;  %v381_v25 = vpop.f32.mrb[1].mxu0  ;;  %v500_v29 = vmul.f32 %v379_v23, %v379_v23 }
  0xf8   : > { %v474_v26 = vmul.f32 %v455_v24, %v379_v23  ;;  %v457_v27 = vpop.f32.mrb[1].mxu1  ;;  %v383_v28 = vpop.f32.mrb[2].mxu0  ;;  %v540_v30 = vmul.f32 %v455_v24, %v455_v24  ;;  %v501_v35 = vmul.f32 %v381_v25, %v381_v25 }
  0xf9   : > { %v475_v31 = vmul.f32 %v457_v27, %v381_v25  ;;  %v502_v32 = vmul.f32 %v383_v28, %v383_v28  ;;  %v459_v33 = vpop.f32.mrb[2].mxu1  ;;  %v385_v34 = vpop.f32.mrb[3].mxu0  ;;  %v541_v40 = vmul.f32 %v457_v27, %v457_v27 }
  0xfa   : > { %v476_v36 = vmul.f32 %v459_v33, %v383_v28  ;;  %v542_v37 = vmul.f32 %v459_v33, %v459_v33  ;;  %v503_v38 = vmul.f32 %v385_v34, %v385_v34  ;;  %v461_v39 = vpop.f32.mrb[3].mxu1 }
  0xfb   : > { %v508_v41 = vadd.f32 %v502_v32, %v500_v29  ;;  %v477_v42 = vmul.f32 %v461_v39, %v385_v34  ;;  %v543_v43 = vmul.f32 %v461_v39, %v461_v39 }
  0xfc   : > { %v482_v44 = vadd.f32 %v476_v36, %v474_v26  ;;  %v548_v45 = vadd.f32 %v542_v37, %v540_v30  ;;  %v517_v46 = vadd.f32 %v503_v38, %v501_v35 }
  0xfd   : > { %v491_v47 = vadd.f32 %v477_v42, %v475_v31  ;;  %v557_v48 = vadd.f32 %v543_v43, %v541_v40 }
  0xfe   : > { %v389_v49 = vpop.f32.mrb[4].mxu0 }
  0xff   : > { %v504_v50 = vmul.f32 %v389_v49, %v389_v49  ;;  %v465_v51 = vpop.f32.mrb[4].mxu1  ;;  %v391_v52 = vpop.f32.mrb[5].mxu0 }
 0x100   : > { %v478_v53 = vmul.f32 %v465_v51, %v389_v49  ;;  %v544_v54 = vmul.f32 %v465_v51, %v465_v51  ;;  %v505_v55 = vmul.f32 %v391_v52, %v391_v52  ;;  %v467_v56 = vpop.f32.mrb[5].mxu1  ;;  %v393_v57 = vpop.f32.mrb[6].mxu0 }
 0x101   : > { %v509_v58 = vadd.f32 %v508_v41, %v504_v50  ;;  %v479_v59 = vmul.f32 %v467_v56, %v391_v52  ;;  %v545_v60 = vmul.f32 %v467_v56, %v467_v56  ;;  %v506_v61 = vmul.f32 %v393_v57, %v393_v57  ;;  %v469_v62 = vpop.f32.mrb[6].mxu1  ;;  %v395_v63 = vpop.f32.mrb[7].mxu0 }
 0x102   : > { %v483_v1 = vadd.f32 %v482_v44, %v478_v53  ;;  %v549_v3 = vadd.f32 %v548_v45, %v544_v54  ;;  %v518_v4 = vadd.f32 %v517_v46, %v505_v55  ;;  %v480_v5 = vmul.f32 %v469_v62, %v393_v57  ;;  %v471_v6 = vpop.f32.mrb[7].mxu1  ;;  %v624_v45 = vpop.permute.xlu1 %623 }
 0x103   : > { %v492_v7 = vadd.f32 %v491_v47, %v479_v59  ;;  %v558_v8 = vadd.f32 %v557_v48, %v545_v60  ;;  %v510_v9 = vadd.f32 %v509_v58, %v506_v61  ;;  %v546_v10 = vmul.f32 %v469_v62, %v469_v62  ;;  %v597_v62 = vpop.permute.xlu0 %596 }
 0x104   : > { %v484_v11 = vadd.f32 %v483_v1, %v480_v5  ;;  %v507_v12 = vmul.f32 %v395_v63, %v395_v63  ;;  %v481_v13 = vmul.f32 %v471_v6, %v395_v63  ;;  %v547_v14 = vmul.f32 %v471_v6, %v471_v6 }
 0x105   : > { %v511_v15 = vrot.slane %v510_v9, 4  ;;  %v550_v16 = vadd.f32 %v549_v3, %v546_v10 }
 0x106   : > { %v519_v17 = vadd.f32 %v518_v4, %v507_v12  ;;  %v493_v18 = vadd.f32 %v492_v7, %v481_v13  ;;  %v559_v19 = vadd.f32 %v558_v8, %v547_v14  ;;  %v485_v43 = vrot.slane %v484_v11, 4  ;;  %v628_v49 = vpop.permute.xlu1 %627 }
 0x107   : > { %v512_v20 = vadd.f32 %v511_v15, %v510_v9  ;;  %v551_v21 = vrot.slane %v550_v16, 4 }
 0x108   : > { %v520_v22 = vrot.slane %v519_v17, 4  ;;  %v560_v23 = vrot.slane %v559_v19, 4  ;;  %v494_v44 = vrot.slane %v493_v18, 4  ;;  %v486_v46 = vadd.f32 %v485_v43, %v484_v11 }
 0x109   : > { %v513_v24 = vrot.slane %v512_v20, 2  ;;  %v552_v25 = vadd.f32 %v551_v21, %v550_v16 }
 0x10a   : > { %v521_v26 = vadd.f32 %v520_v22, %v519_v17  ;;  %v561_v27 = vadd.f32 %v560_v23, %v559_v19  ;;  %v495_v47 = vadd.f32 %v494_v44, %v493_v18  ;;  %v487_v51 = vrot.slane %v486_v46, 2  ;;  %v612_v8 = vpop.permute.xlu1 %611  ;;  %v602_v17 = vpop.permute.xlu0 %601 }
 0x10b   : > { %v514_v28 = vadd.f32 %v513_v24, %v512_v20  ;;  %v553_v29 = vrot.slane %v552_v25, 2 }
 0x10c   : > { %v522_v30 = vrot.slane %v521_v26, 2  ;;  %v562_v31 = vrot.slane %v561_v27, 2  ;;  %v496_v52 = vrot.slane %v495_v47, 2  ;;  %v488_v16 = vadd.f32 %v487_v51, %v486_v46 }
 0x10d   : > { %v515_v32 = vrot.slane %v514_v28, 1  ;;  %v554_v33 = vadd.f32 %v553_v29, %v552_v25 }
 0x10e   : > { %v523_v34 = vadd.f32 %v522_v30, %v521_v26  ;;  %v563_v35 = vadd.f32 %v562_v31, %v561_v27  ;;  %v497_v18 = vadd.f32 %v496_v52, %v495_v47  ;;  %v636_v20 = vpop.permute.xlu1 %635  ;;  %v489_v21 = vrot.slane %v488_v16, 1  ;;  %v607_v23 = vpop.permute.xlu0 %606 }
 0x10f   : > { %v516_v36 = vadd.f32 %v515_v32, %v514_v28  ;;  %v555_v37 = vrot.slane %v554_v33, 1 }
 0x110   : > { %v524_v38 = vrot.slane %v523_v34, 1  ;;  %v564_v39 = vrot.slane %v563_v35, 1  ;;  %v498_v22 = vrot.slane %v497_v18, 1  ;;  %v490_v25 = vadd.f32 %v489_v21, %v488_v16 }
 0x111   : > { %988 = vrsqrt.f32 %v516_v36  ;;  %v556_v40 = vadd.f32 %v555_v37, %v554_v33  ;;  %vm528_vm13 = vcmp.eq.f32.partialorder %v516_v36, inf  ;;  %v531_v54 = vand.u32 2147483648, %v516_v36 }
 0x112   : > { %v525_v41 = vadd.f32 %v524_v38, %v523_v34  ;;  %v565_v42 = vadd.f32 %v564_v39, %v563_v35  ;;  %vm530_vm0 = vcmp.eq.f32.partialorder %v516_v36, 0.0  ;;  %v656_v24 = vpop.permute.xlu1 %655  ;;  %v499_v26 = vadd.f32 %v498_v22, %v497_v18  ;;  %v632_v30 = vpop.permute.xlu0 %631 }
 0x113   : > { %990 = vrsqrt.f32 %v556_v40  ;;  %vm568_vm14 = vcmp.eq.f32.partialorder %v556_v40, inf  ;;  %v571_v55 = vand.u32 2147483648, %v556_v40  ;;  %vm570_vm2 = vcmp.eq.f32.partialorder %v556_v40, 0.0 }
 0x114   : > { %992 = vrsqrt.f32 %v525_v41  ;;  %vm535_vm15 = vcmp.eq.f32.partialorder %v525_v41, inf  ;;  %v538_v61 = vand.u32 2147483648, %v525_v41  ;;  %vm575_vm1 = vcmp.eq.f32.partialorder %v565_v42, inf }
 0x115   : > { %994 = vrsqrt.f32 %v565_v42  ;;  %v578_v5 = vand.u32 2147483648, %v565_v42  ;;  %vm537_vm3 = vcmp.eq.f32.partialorder %v525_v41, 0.0  ;;  %vm577_vm4 = vcmp.eq.f32.partialorder %v565_v42, 0.0 }
 0x116   : > { %v638_v28 = vmul.f32 %v624_v45, %v490_v25  ;;  %v664_v31 = vpop.permute.xlu1 %663  ;;  %v639_v33 = vmul.f32 %v624_v45, %v499_v26  ;;  %v640_v34 = vmul.f32 %v628_v49, %v490_v25  ;;  %v641_v35 = vmul.f32 %v628_v49, %v499_v26  ;;  %v660_v51 = vpop.permute.xlu0 %659 }
 0x117   : > { %v642_v43 = vmul.f32 %v632_v30, %v490_v25  ;;  %v643_v44 = vmul.f32 %v632_v30, %v499_v26 }
 0x11b   : > { %v989_v48 = vpop.eup %988 }
 0x11c   : > { %v527_v50 = vmul.f32 %v989_v48, %v516_v36 }
 0x11d   : > { %v991_v53 = vpop.eup %990 }
 0x11e   : > { %v993_v56 = vpop.eup %992  ;;  %v567_v57 = vmul.f32 %v991_v53, %v556_v40  ;;  %v529_v58 = vsel %vm528_vm13, %v516_v36, %v527_v50  ;;  %v644_v36 = vmul.f32 %v636_v20, %v490_v25 }
 0x11f   : > { %v995_v59 = vpop.eup %994  ;;  %v534_v60 = vmul.f32 %v993_v56, %v525_v41  ;;  %v532_v63 = vsel %vm530_vm0, %v531_v54, %v529_v58  ;;  %v668_v56 = vpop.permute.xlu1 %667 }
 0x120   : > { %v574_v1 = vmul.f32 %v995_v59, %v565_v42  ;;  %v569_v3 = vsel %vm568_vm14, %v556_v40, %v567_v57  ;;  %v580_v4 = vmax.f32 %v532_v63, 1e-08 }
 0x121   : > { %v536_v6 = vsel %vm535_vm15, %v525_v41, %v534_v60  ;;  %v572_v7 = vsel %vm570_vm2, %v571_v55, %v569_v3 }
 0x122   : > { %v539_v9 = vsel %vm537_vm3, %v538_v61, %v536_v6  ;;  %v576_v10 = vsel %vm575_vm1, %v565_v42, %v574_v1  ;;  %v582_v11 = vmax.f32 %v572_v7, 1e-08  ;;  %v645_v42 = vmul.f32 %v636_v20, %v499_v26 }
 0x123   : > { %v579_v12 = vsel %vm577_vm4, %v578_v5, %v576_v10  ;;  %v581_v13 = vmax.f32 %v539_v9, 1e-08  ;;  %v702_v18 = vpop.permute.xlu1 %701 }
 0x124   : > { %v583_v14 = vmax.f32 %v579_v12, 1e-08  ;;  %v584_v15 = vmul.f32 %v582_v11, %v580_v4 }
 0x126   : > { %v585_v19 = vmul.f32 %v583_v14, %v581_v13  ;;  %996 = vrcp.f32 %v584_v15 }
 0x127   : > { %v762_v30 = vpop.permute.xlu1 %761 }
 0x128   : > { %998 = vrcp.f32 %v585_v19  ;;  %v697_v19 = vpop.permute.xlu0 %696 }
 0x130   : > { %v997_v27 = vpop.eup %996 }
 0x131   : > { %v588_v29 = vmul.f32 %v997_v27, %v490_v25 }
 0x132   : > { %v999_v32 = vpop.eup %998 }
 0x133   : > { %v589_v37 = vmul.f32 %v999_v32, %v499_v26  ;;  %v614_v38 = vmul.f32 %v597_v62, %v588_v29  ;;  %v616_v39 = vmul.f32 %v602_v17, %v588_v29  ;;  %v620_v40 = vmul.f32 %v612_v8, %v588_v29 }
 0x134   : > { %v618_v41 = vmul.f32 %v607_v23, %v588_v29 }
 0x135   : > { %v615_v46 = vmul.f32 %v597_v62, %v589_v37  ;;  %v617_v47 = vmul.f32 %v602_v17, %v589_v37  ;;  %v621_v48 = vmul.f32 %v612_v8, %v589_v37  ;;  %v619_v50 = vmul.f32 %v607_v23, %v589_v37  ;;  %v987_v17 = vld [vmem:[%s1276_s4] sm:$0xff]  }
 0x136   : > { %v646_v52 = vadd.f32 %v638_v28, %v614_v38  ;;  %v650_v53 = vadd.f32 %v642_v43, %v618_v41  ;;  %v652_v54 = vadd.f32 %v644_v36, %v620_v40  ;;  %v648_v45 = vadd.f32 %v640_v34, %v616_v39 }
 0x137   : > { %v647_v55 = vadd.f32 %v639_v33, %v615_v46  ;;  %v651_v49 = vadd.f32 %v643_v44, %v619_v50  ;;  %v653_v57 = vadd.f32 %v645_v42, %v621_v48  ;;  %v649_v58 = vadd.f32 %v641_v35, %v617_v47 }
 0x138   : > { %v670_v59 = vadd.f32 %v656_v24, %v646_v52  ;;  %v674_v60 = vadd.f32 %v664_v31, %v650_v53  ;;  %v676_v61 = vadd.f32 %v668_v56, %v652_v54  ;;  %v672_v63 = vadd.f32 %v660_v51, %v648_v45 }
 0x139   : > { %v671_v1 = vadd.f32 %v656_v24, %v647_v55  ;;  %v675_v3 = vadd.f32 %v664_v31, %v651_v49  ;;  %v677_v62 = vadd.f32 %v668_v56, %v653_v57  ;;  %v673_v4 = vadd.f32 %v660_v51, %v649_v58  ;;  %v766_v31 = vpop.permute.xlu0 %765 }
 0x13a   : > { %v678_v5 = vmax.f32 %v670_v59, 0.0  ;;  %v682_v6 = vmax.f32 %v674_v60, 0.0  ;;  %v684_v7 = vmax.f32 %v676_v61, 0.0  ;;  %v680_v8 = vmax.f32 %v672_v63, 0.0 }
 0x13b   : > { %v679_v9 = vmax.f32 %v671_v1, 0.0  ;;  %v683_v10 = vmax.f32 %v675_v3, 0.0  ;;  %v685_v11 = vmax.f32 %v677_v62, 0.0  ;;  %v681_v12 = vmax.f32 %v673_v4, 0.0 }
 0x13c   : > { %v692_v13 = vpack.c.bf16 %v684_v7, %v682_v6  ;;  %v690_v14 = vpack.c.bf16 %v680_v8, %v678_v5  ;;  %v1068_v47 = vmov 1966171168   ;;  %v787_v53 = vstv %s786_s24 }
 0x13d   : > { %v691_v15 = vpack.c.bf16 %v681_v12, %v679_v9  ;;  %v693_v16 = vpack.c.bf16 %v685_v11, %v683_v10  ;;  %v794_v48 = vunpack.c.l.s4 %v1068_v47 }
 0x13f   : > { %713 = vmatprep.subr.bf16.mxu0 %v691_v15  ;;  %v795_v45 = vunpack.c.0.s8 %v794_v48 }
 0x140   : > { %714 = vmatpush1.bf16.msra.mxu0 %v690_v14 }
 0x141   : > { %715 = vmatprep.subr.bf16.mxu0 %v693_v16  ;;  %v798_v58 = vsub.s32 %v795_v45, %v1165_v2 }
 0x144   : > { %716 = vmatpush1.bf16.msra.mxu0 %v692_v13 }
 0x147   : > { %923 = vmatmul.mubr.msk.bf16.vlgmr.msra.gmra.mrb[8].mxu0 %vm709_vm5, %v987_v17 }
 0x21a   : > { %v747_v20 = vpop.f32.mrb[8].mxu0 }
 0x21b   : > { %v749_v21 = vpop.f32.mrb[9].mxu0  ;;  %v748_v22 = vadd.f32 %v747_v20, %v697_v19 }
 0x21c   : > { %v751_v23 = vpop.f32.mrb[10].mxu0  ;;  %v750_v24 = vadd.f32 %v749_v21, %v697_v19 }
 0x21d   : > { %v752_v25 = vadd.f32 %v751_v23, %v702_v18  ;;  %v756_v26 = vmax.f32 %v748_v22, 0.0  ;;  %v753_v27 = vpop.f32.mrb[11].mxu0 }
 0x21e   : > { %v757_v28 = vmax.f32 %v750_v24, 0.0  ;;  %v754_v29 = vadd.f32 %v753_v27, %v702_v18 }
 0x21f   : > { %v758_v32 = vmax.f32 %v752_v25, 0.0  ;;  %v768_v34 = vmul.f32 %v762_v30, %v756_v26 }
 0x220   : > { %v759_v33 = vmax.f32 %v754_v29, 0.0  ;;  %v769_v36 = vmul.f32 %v762_v30, %v757_v28 }
 0x221   : > { %v770_v35 = vmul.f32 %v766_v31, %v758_v32 }
 0x222   : > { %v771_v37 = vmul.f32 %v766_v31, %v759_v33 }
 0x223   : > { %v772_v38 = vadd.f32 %v770_v35, %v768_v34 }
 0x224   : > { %v779_v39 = vadd.f32 %v771_v37, %v769_v36 }
 0x225   : > { %v773_v40 = vrot.slane %v772_v38, 4 }
 0x226   : > { %v780_v41 = vrot.slane %v779_v39, 4 }
 0x227   : > { %v774_v42 = vadd.f32 %v773_v40, %v772_v38 }
 0x228   : > { %v781_v43 = vadd.f32 %v780_v41, %v779_v39 }
 0x229   : > { %v775_v44 = vrot.slane %v774_v42, 2 }
 0x22a   : > { %v782_v46 = vrot.slane %v781_v43, 2 }
 0x22b   : > { %v776_v50 = vadd.f32 %v775_v44, %v774_v42 }
 0x22c   : > { %v783_v51 = vadd.f32 %v782_v46, %v781_v43 }
 0x22d   : > { %v777_v52 = vrot.slane %v776_v50, 1 }
 0x22e   : > { %v784_v54 = vrot.slane %v783_v51, 1 }
 0x22f   : > { %v778_v55 = vadd.f32 %v777_v52, %v776_v50 }
 0x230   : > { %v785_v49 = vadd.f32 %v784_v54, %v783_v51 }
 0x231   : > { %v788_v56 = vadd.f32 %v787_v53, %v778_v55 }
 0x232   : > { %v789_v57 = vadd.f32 %v787_v53, %v785_v49 }
 0x234   : > { %v792_v59 = vcombine.low %v788_v56, %v789_v57 }
 0x236   : > { %v799_v60 = vrot.slane %v792_v59, %v798_v58 }
 0x238   : > { %v806_v61 = vrot.slane %v799_v60, %v798_v58 }
 0x23a   : > { %812 = vst.msk [vmem:[%s285_s10] sm:$0x3] %vm810_vm6, %v806_v61 }
 0x23b   : > { %1013 = shalt.err (!%p1010_p3)
}
 0x23c   : > { %s1014_s22 = scalar_lea.hbm %s1230_s17, 32  ;;  %s1018_s25 = scalar_lea.hbm %s1279_s7, 64 }
 0x23d   : > { %p1015_p4 = scmp.ne.s32.totalorder %s1230_s17, %s1014_s22  ;;  %p1019_p9 = scmp.lt.u32.totalorder %s1230_s17, %s1279_s7 }
 0x23e   : > { %p1020_p10 = scmp.lt.u32.totalorder %s1018_s25, %s1014_s22  ;;  %p1022_p12 = scmp.lt.u32.totalorder %s1014_s22, %s1230_s17 }
 0x23f   : > { %p1016_p7 = pnand %p1015_p4, %p1151_p5 }
 0x240   : > { %p1021_p11 = por %p1020_p10, %p1019_p9 }
 0x241   : > { %p1017_p8 = pneg %p1016_p7 }
 0x242   : > { %p1023_p13 = por %p1022_p12, %p1021_p11 }
 0x244   : > { %p1024_p0 = pnand %p1023_p13, %p1017_p8 }
 0x246   : > { %1027 = shalt.err (!%p1024_p0)
}
 0x247   : > { %930 = dma.vmem_to_hbm [thread:$0]  (%p1151_p5), %s1232_s14, 32, %s1230_s17, %s814_s18  }
 0x248 PF: > { %p936_p1 = scmp.ge.s32.totalorder %s1062_s29, 2  ;;  %s840_s10 = sand.u32 1, %s1050_s26  }
 0x249   : > { %s841_s15 = scalar_lea.sflag [#allocation4], %s840_s10 }
 0x24a   : > { %p933_p2 = pnand %p936_p1, %p1155_p6 }
 0x24c   : > { %1045 = dma.done.wait (!%p933_p2), %s841_s15, 32  }
 0x24d   : > { %1047 = vsyncadd (!%p933_p2), %s841_s15, 4294967264  ;;  %p18_p3 = scmp.ge.s32.totalorder %s1138_s8, 4   ;;  %s1282_s26 = smov %s1054_s27 }
 0x24e   : > { %s1283_s27 = smov %s1058_s28  ;;  %s1284_s28 = smov %s1149_s11 }
 0x24f   : > { %s1285_s29 = smov %s1138_s8  ;;  %20 = sbr.rel (!%p18_p3) target bundleno = 5 (0x5), region = 86 }
 0x256   :  { %846 = vsyncpa [#allocation4], 1 }
 0x257   :  { %848 = vsyncpa [#allocation4 + $0x1], 1 }

</bundles_post_ra>
